<compile_context>
chip_gen: v7x
topology: tpu7x:2x2x1
jax: 0.10.0
libtpu: 0.0.40
codegen_flags: <defaults>
</compile_context>

<pallas_src>
import jax
import jax.numpy as jnp
from jax.experimental import pallas as pl
from jax.experimental.pallas import tpu as pltpu

LOG_STD_MIN = -20.0
LOG_STD_MAX = 2.0


def _policy_kernel(x_ref, w1_ref, b1_ref, w2_ref, b2_ref, wh_ref, bh_ref,
                   lo_ref, hi_ref, out_ref):
    """Feature-major forward: x is [state_dim, TILE_B], output [2A, TILE_B]."""
    cdt = x_ref.dtype                      # compute dtype (f32 or bf16)
    x = x_ref[...]

    # Layer 1: h1 = relu(W1^T @ x + b1)   -> [hidden, TILE_B]
    h1 = jnp.dot(w1_ref[...], x, preferred_element_type=jnp.float32) + b1_ref[...]
    h1 = jnp.maximum(h1, 0.0).astype(cdt)

    # Layer 2: h2 = relu(W2^T @ h1 + b2)  -> [hidden, TILE_B]
    h2 = jnp.dot(w2_ref[...], h1, preferred_element_type=jnp.float32) + b2_ref[...]
    h2 = jnp.maximum(h2, 0.0).astype(cdt)

    # Fused heads: [2A, hidden] @ [hidden, TILE_B] -> [2A, TILE_B]
    heads = jnp.dot(wh_ref[...], h2, preferred_element_type=jnp.float32) + bh_ref[...]

    # Per-row clamp: mean rows get (-inf, +inf) (no-op), log_std rows get
    # (log_std_min, log_std_max).  Single clip, no iota/select per step.
    out_ref[...] = jnp.clip(heads, lo_ref[...], hi_ref[...]).astype(out_ref.dtype)


def prepare_params(params, log_std_min=LOG_STD_MIN, log_std_max=LOG_STD_MAX,
                   dtype=jnp.float32):
    """One-time layout prep, hoisted off the hot forward path:
       weights transposed to [out, in], mean/log_std heads fused, biases as
       [out, 1] columns, per-row clamp bounds built once.  `dtype` controls
       the matmul input dtype (bf16 recommended on v6e/v7x; accumulation is
       always f32)."""
    action_dim = params["wm"].shape[1]
    w1_t = params["w1"].T.astype(dtype)                                   # [H, S]
    w2_t = params["w2"].T.astype(dtype)                                   # [H, H]
    wh_t = jnp.concatenate([params["wm"].T, params["ws"].T], 0).astype(dtype)  # [2A, H]
    b1_t = params["b1"].reshape(-1, 1).astype(jnp.float32)                # [H, 1]
    b2_t = params["b2"].reshape(-1, 1).astype(jnp.float32)                # [H, 1]
    bh_t = jnp.concatenate([params["bm"].reshape(-1, 1),
                            params["bs"].reshape(-1, 1)], 0).astype(jnp.float32)  # [2A, 1]
    lo = jnp.concatenate([jnp.full((action_dim, 1), -jnp.inf, jnp.float32),
                          jnp.full((action_dim, 1), float(log_std_min), jnp.float32)], 0)
    hi = jnp.concatenate([jnp.full((action_dim, 1), jnp.inf, jnp.float32),
                          jnp.full((action_dim, 1), float(log_std_max), jnp.float32)], 0)
    return dict(w1_t=w1_t, b1_t=b1_t, w2_t=w2_t, b2_t=b2_t,
                wh_t=wh_t, bh_t=bh_t, lo=lo, hi=hi,
                action_dim=int(action_dim), dtype=dtype)


def gaussian_policy_forward(state, prepped, *, tile_b=2048):
    """state: [B, state_dim] f32.  prepped: output of prepare_params().
       Returns (mean, log_std), each [B, action_dim] f32."""
    B, state_dim = state.shape
    hidden_dim = prepped["w1_t"].shape[0]
    action_dim = prepped["action_dim"]
    out_dim = 2 * action_dim
    cdt = prepped["dtype"]

    # Batch on the lane (last) axis.
    x_t = state.T.astype(cdt)                                  # [state_dim, B]

    # Tile the batch.  Single full-extent block for small B (no alignment
    # constraint); otherwise a 128-multiple tile with Pallas masking the
    # ragged last block (no padded copy of state).
    if B <= tile_b:
        TILE_B, grid_b = B, 1
    else:
        TILE_B = max(128, (int(tile_b) // 128) * 128)
        grid_b = pl.cdiv(B, TILE_B)

    itemsize = jnp.dtype(cdt).itemsize
    weight_bytes = (itemsize * (state_dim * hidden_dim
                                + hidden_dim * hidden_dim
                                + hidden_dim * out_dim)
                    + 4 * (2 * hidden_dim + 3 * out_dim))
    cost = pl.CostEstimate(
        flops=2 * B * (state_dim * hidden_dim
                       + hidden_dim * hidden_dim
                       + hidden_dim * out_dim),
        transcendentals=0,
        bytes_accessed=itemsize * B * state_dim + 4 * B * out_dim + weight_bytes,
    )

    const2 = lambda i: (0, 0)   # weights / biases / bounds resident in VMEM

    slab = pl.pallas_call(
        _policy_kernel,
        out_shape=jax.ShapeDtypeStruct((out_dim, B), jnp.float32),
        grid=(grid_b,),
        in_specs=[
            pl.BlockSpec((state_dim, TILE_B), lambda i: (0, i)),
            pl.BlockSpec((hidden_dim, state_dim), const2),
            pl.BlockSpec((hidden_dim, 1), const2),
            pl.BlockSpec((hidden_dim, hidden_dim), const2),
            pl.BlockSpec((hidden_dim, 1), const2),
            pl.BlockSpec((out_dim, hidden_dim), const2),
            pl.BlockSpec((out_dim, 1), const2),
            pl.BlockSpec((out_dim, 1), const2),
            pl.BlockSpec((out_dim, 1), const2),
        ],
        out_specs=pl.BlockSpec((out_dim, TILE_B), lambda i: (0, i)),
        compiler_params=pltpu.CompilerParams(
            dimension_semantics=("parallel",)),
        cost_estimate=cost,
    )(x_t, prepped["w1_t"], prepped["b1_t"], prepped["w2_t"], prepped["b2_t"],
      prepped["wh_t"], prepped["bh_t"], prepped["lo"], prepped["hi"])

    mean = slab[:action_dim, :].T
    log_std = slab[action_dim:, :].T
    return mean, log_std


def init_params(key, state_dim, action_dim, hidden_dim):
    """Deterministic init mimicking torch.nn.Linear default
    (U[-1/sqrt(fan_in), 1/sqrt(fan_in)]). Weights stored as [in, out]."""
    keys = jax.random.split(key, 8)

    def lin(kw, kb, fan_in, fan_out):
        bound = 1.0 / jnp.sqrt(fan_in)
        w = jax.random.uniform(kw, (fan_in, fan_out), jnp.float32, -bound, bound)
        b = jax.random.uniform(kb, (1, fan_out), jnp.float32, -bound, bound)
        return w, b

    w1, b1 = lin(keys[0], keys[1], state_dim, hidden_dim)
    w2, b2 = lin(keys[2], keys[3], hidden_dim, hidden_dim)
    wm, bm = lin(keys[4], keys[5], hidden_dim, action_dim)
    ws, bs = lin(keys[6], keys[7], hidden_dim, action_dim)
    return dict(w1=w1, b1=b1, w2=w2, b2=b2, wm=wm, bm=bm, ws=ws, bs=bs)


if __name__ == "__main__":
    key = jax.random.PRNGKey(0)
    k_params, k_state = jax.random.split(key)

    batch, state_dim, action_dim, hidden_dim = 8, 16, 8, 32

    params = init_params(k_params, state_dim, action_dim, hidden_dim)
    state = jax.random.normal(k_state, (batch, state_dim), jnp.float32)

    prepped = prepare_params(params)                      # one-time layout prep
    mean, log_std = gaussian_policy_forward(state, prepped)
    jax.block_until_ready((mean, log_std))

    # Pure-JAX reference
    def ref(x, p):
        h1 = jnp.maximum(x @ p["w1"] + p["b1"], 0.0)
        h2 = jnp.maximum(h1 @ p["w2"] + p["b2"], 0.0)
        m = h2 @ p["wm"] + p["bm"]
        ls = jnp.clip(h2 @ p["ws"] + p["bs"], LOG_STD_MIN, LOG_STD_MAX)
        return m, ls

    m_ref, ls_ref = ref(state, params)
    assert mean.shape == (batch, action_dim) and log_std.shape == (batch, action_dim)
    assert jnp.allclose(mean, m_ref, atol=1e-5, rtol=1e-5)
    assert jnp.allclose(log_std, ls_ref, atol=1e-5, rtol=1e-5)

    # Gridded batch with a ragged last block (no explicit padding copy).
    big_state = jax.random.normal(jax.random.PRNGKey(1), (1000, state_dim), jnp.float32)
    m_big, ls_big = gaussian_policy_forward(big_state, prepped, tile_b=256)
    jax.block_until_ready((m_big, ls_big))
    m_big_ref, ls_big_ref = ref(big_state, params)
    assert m_big.shape == (1000, action_dim)
    assert jnp.allclose(m_big, m_big_ref, atol=1e-5, rtol=1e-5)
    assert jnp.allclose(ls_big, ls_big_ref, atol=1e-5, rtol=1e-5)

    # bf16 compute path (v6e/v7x bandwidth win), f32 accumulation.
    prepped_bf16 = prepare_params(params, dtype=jnp.bfloat16)
    m_bf, ls_bf = gaussian_policy_forward(state, prepped_bf16)
    jax.block_until_ready((m_bf, ls_bf))
    assert jnp.allclose(m_bf, m_ref, atol=5e-2, rtol=5e-2)
    assert jnp.allclose(ls_bf, ls_ref, atol=5e-2, rtol=5e-2)

    print("KERNEL_OK")
</pallas_src>

<mosaic_0001>
module attributes {stable_mosaic.version = 11 : i64} {
  func.func @_policy_kernel(%arg0: i32, %arg1: memref<16x8xf32, #tpu.memory_space<vmem>>, %arg2: memref<32x16xf32, #tpu.memory_space<vmem>>, %arg3: memref<32x1xf32, #tpu.memory_space<vmem>>, %arg4: memref<32x32xf32, #tpu.memory_space<vmem>>, %arg5: memref<32x1xf32, #tpu.memory_space<vmem>>, %arg6: memref<16x32xf32, #tpu.memory_space<vmem>>, %arg7: memref<16x1xf32, #tpu.memory_space<vmem>>, %arg8: memref<16x1xf32, #tpu.memory_space<vmem>>, %arg9: memref<16x1xf32, #tpu.memory_space<vmem>>, %arg10: memref<16x8xf32, #tpu.memory_space<vmem>>) attributes {dimension_semantics = [#tpu.dimension_semantics<parallel>], iteration_bounds = array<i64: 1>, scalar_prefetch = 0 : i64, scratch_operands = 0 : i64, tpu.core_type = #tpu.core_type<tc>, window_params = [{transform_indices = @transform_0, window_bounds = array<i64: 16, 8>}, {pipeline_mode = #tpu.pipeline_mode<synchronous>, transform_indices = @transform_1, window_bounds = array<i64: 32, 16>}, {pipeline_mode = #tpu.pipeline_mode<synchronous>, transform_indices = @transform_2, window_bounds = array<i64: 32, 1>}, {pipeline_mode = #tpu.pipeline_mode<synchronous>, transform_indices = @transform_3, window_bounds = array<i64: 32, 32>}, {pipeline_mode = #tpu.pipeline_mode<synchronous>, transform_indices = @transform_4, window_bounds = array<i64: 32, 1>}, {pipeline_mode = #tpu.pipeline_mode<synchronous>, transform_indices = @transform_5, window_bounds = array<i64: 16, 32>}, {pipeline_mode = #tpu.pipeline_mode<synchronous>, transform_indices = @transform_6, window_bounds = array<i64: 16, 1>}, {pipeline_mode = #tpu.pipeline_mode<synchronous>, transform_indices = @transform_7, window_bounds = array<i64: 16, 1>}, {pipeline_mode = #tpu.pipeline_mode<synchronous>, transform_indices = @transform_8, window_bounds = array<i64: 16, 1>}, {transform_indices = @transform_9, window_bounds = array<i64: 16, 8>}]} {
    %c0 = arith.constant 0 : index
    %c0_0 = arith.constant 0 : index
    %0 = vector.load %arg1[%c0, %c0_0] : memref<16x8xf32, #tpu.memory_space<vmem>>, vector<16x8xf32>
    %c0_1 = arith.constant 0 : index
    %c0_2 = arith.constant 0 : index
    %1 = vector.load %arg2[%c0_1, %c0_2] : memref<32x16xf32, #tpu.memory_space<vmem>>, vector<32x16xf32>
    %cst = arith.constant dense<0.000000e+00> : vector<32x8xf32>
    %2 = tpu.matmul %1, %0, %cst {dimension_numbers = #tpu.dot_dimension_numbers<[1], [0], [0], [1], [0, 0, 1, 1], [], []>} : vector<32x16xf32>, vector<16x8xf32>, vector<32x8xf32> -> vector<32x8xf32>
    %c0_3 = arith.constant 0 : index
    %c0_4 = arith.constant 0 : index
    %3 = vector.load %arg3[%c0_3, %c0_4] : memref<32x1xf32, #tpu.memory_space<vmem>>, vector<32x1xf32>
    %4 = vector.broadcast %3 : vector<32x1xf32> to vector<32x8xf32>
    %5 = arith.addf %2, %4 : vector<32x8xf32>
    %cst_5 = arith.constant 0.000000e+00 : f32
    %6 = vector.broadcast %cst_5 : f32 to vector<32x8xf32>
    %7 = arith.maximumf %5, %6 : vector<32x8xf32>
    %c0_6 = arith.constant 0 : index
    %c0_7 = arith.constant 0 : index
    %8 = vector.load %arg4[%c0_6, %c0_7] : memref<32x32xf32, #tpu.memory_space<vmem>>, vector<32x32xf32>
    %cst_8 = arith.constant dense<0.000000e+00> : vector<32x8xf32>
    %9 = tpu.matmul %8, %7, %cst_8 {dimension_numbers = #tpu.dot_dimension_numbers<[1], [0], [0], [1], [0, 0, 1, 1], [], []>} : vector<32x32xf32>, vector<32x8xf32>, vector<32x8xf32> -> vector<32x8xf32>
    %c0_9 = arith.constant 0 : index
    %c0_10 = arith.constant 0 : index
    %10 = vector.load %arg5[%c0_9, %c0_10] : memref<32x1xf32, #tpu.memory_space<vmem>>, vector<32x1xf32>
    %11 = vector.broadcast %10 : vector<32x1xf32> to vector<32x8xf32>
    %12 = arith.addf %9, %11 : vector<32x8xf32>
    %cst_11 = arith.constant 0.000000e+00 : f32
    %13 = vector.broadcast %cst_11 : f32 to vector<32x8xf32>
    %14 = arith.maximumf %12, %13 : vector<32x8xf32>
    %c0_12 = arith.constant 0 : index
    %c0_13 = arith.constant 0 : index
    %15 = vector.load %arg6[%c0_12, %c0_13] : memref<16x32xf32, #tpu.memory_space<vmem>>, vector<16x32xf32>
    %cst_14 = arith.constant dense<0.000000e+00> : vector<16x8xf32>
    %16 = tpu.matmul %15, %14, %cst_14 {dimension_numbers = #tpu.dot_dimension_numbers<[1], [0], [0], [1], [0, 0, 1, 1], [], []>} : vector<16x32xf32>, vector<32x8xf32>, vector<16x8xf32> -> vector<16x8xf32>
    %c0_15 = arith.constant 0 : index
    %c0_16 = arith.constant 0 : index
    %17 = vector.load %arg7[%c0_15, %c0_16] : memref<16x1xf32, #tpu.memory_space<vmem>>, vector<16x1xf32>
    %18 = vector.broadcast %17 : vector<16x1xf32> to vector<16x8xf32>
    %19 = arith.addf %16, %18 : vector<16x8xf32>
    %c0_17 = arith.constant 0 : index
    %c0_18 = arith.constant 0 : index
    %20 = vector.load %arg8[%c0_17, %c0_18] : memref<16x1xf32, #tpu.memory_space<vmem>>, vector<16x1xf32>
    %c0_19 = arith.constant 0 : index
    %c0_20 = arith.constant 0 : index
    %21 = vector.load %arg9[%c0_19, %c0_20] : memref<16x1xf32, #tpu.memory_space<vmem>>, vector<16x1xf32>
    %22 = vector.broadcast %20 : vector<16x1xf32> to vector<16x8xf32>
    %23 = arith.maximumf %22, %19 : vector<16x8xf32>
    %24 = vector.broadcast %21 : vector<16x1xf32> to vector<16x8xf32>
    %25 = arith.minimumf %24, %23 : vector<16x8xf32>
    %c0_21 = arith.constant 0 : index
    %c0_22 = arith.constant 0 : index
    %26 = vector.load %arg10[%c0_21, %c0_22] : memref<16x8xf32, #tpu.memory_space<vmem>>, vector<16x8xf32>
    tpu.vector_store %arg10[%c0_21, %c0_22], %25 {strides = array<i32>} : memref<16x8xf32, #tpu.memory_space<vmem>>, vector<16x8xf32>,
    return
  }
  func.func @transform_0(%arg0: i32) -> (i32, i32) {
    %c0_i32 = arith.constant 0 : i32
    %c0_i32_0 = arith.constant 0 : i32
    return %c0_i32, %arg0 : i32, i32
  }
  func.func @transform_1(%arg0: i32) -> (i32, i32) {
    %c0_i32 = arith.constant 0 : i32
    %c0_i32_0 = arith.constant 0 : i32
    %c0_i32_1 = arith.constant 0 : i32
    return %c0_i32, %c0_i32_0 : i32, i32
  }
  func.func @transform_2(%arg0: i32) -> (i32, i32) {
    %c0_i32 = arith.constant 0 : i32
    %c0_i32_0 = arith.constant 0 : i32
    %c0_i32_1 = arith.constant 0 : i32
    return %c0_i32, %c0_i32_0 : i32, i32
  }
  func.func @transform_3(%arg0: i32) -> (i32, i32) {
    %c0_i32 = arith.constant 0 : i32
    %c0_i32_0 = arith.constant 0 : i32
    %c0_i32_1 = arith.constant 0 : i32
    return %c0_i32, %c0_i32_0 : i32, i32
  }
  func.func @transform_4(%arg0: i32) -> (i32, i32) {
    %c0_i32 = arith.constant 0 : i32
    %c0_i32_0 = arith.constant 0 : i32
    %c0_i32_1 = arith.constant 0 : i32
    return %c0_i32, %c0_i32_0 : i32, i32
  }
  func.func @transform_5(%arg0: i32) -> (i32, i32) {
    %c0_i32 = arith.constant 0 : i32
    %c0_i32_0 = arith.constant 0 : i32
    %c0_i32_1 = arith.constant 0 : i32
    return %c0_i32, %c0_i32_0 : i32, i32
  }
  func.func @transform_6(%arg0: i32) -> (i32, i32) {
    %c0_i32 = arith.constant 0 : i32
    %c0_i32_0 = arith.constant 0 : i32
    %c0_i32_1 = arith.constant 0 : i32
    return %c0_i32, %c0_i32_0 : i32, i32
  }
  func.func @transform_7(%arg0: i32) -> (i32, i32) {
    %c0_i32 = arith.constant 0 : i32
    %c0_i32_0 = arith.constant 0 : i32
    %c0_i32_1 = arith.constant 0 : i32
    return %c0_i32, %c0_i32_0 : i32, i32
  }
  func.func @transform_8(%arg0: i32) -> (i32, i32) {
    %c0_i32 = arith.constant 0 : i32
    %c0_i32_0 = arith.constant 0 : i32
    %c0_i32_1 = arith.constant 0 : i32
    return %c0_i32, %c0_i32_0 : i32, i32
  }
  func.func @transform_9(%arg0: i32) -> (i32, i32) {
    %c0_i32 = arith.constant 0 : i32
    %c0_i32_0 = arith.constant 0 : i32
    return %c0_i32, %arg0 : i32, i32
  }
}

</mosaic_0001>

<bundles_post_ra>
// kernel: tpu_custom_call.1
= control target key start
LH: loop header
LB: loop body
LE: loop exit
PB: predicated region body
PF: predicated region fallthrough
CT: control target
= control target key end

     0   :  { %vm62_vm0 = vcmask 130048   ;;  %v512_v3 = vmov 0   ;;  %vm192_vm1 = vcmask 261120   ;;  %vm417_vm2 = vcmask 64512   ;;  %s657_s0 = inlined_call_operand.vmem [shape: f32[16,8], index: 0, kind: input, shape index: {}]   ;;  %s658_s1 = inlined_call_operand.vmem [shape: f32[32,16], index: 1, kind: input, shape index: {}]   ;;  %s659_s2 = inlined_call_operand.vmem [shape: f32[32,1], index: 2, kind: input, shape index: {}]   ;;  %s660_s4 = inlined_call_operand.vmem [shape: f32[32,1], index: 4, kind: input, shape index: {}]   ;;  %s661_s6 = inlined_call_operand.vmem [shape: f32[16,1], index: 6, kind: input, shape index: {}]   ;;  %s662_s7 = inlined_call_operand.vmem [shape: f32[16,1], index: 7, kind: input, shape index: {}]   ;;  %s663_s8 = inlined_call_operand.vmem [shape: f32[16,1], index: 8, kind: input, shape index: {}]   ;;  %s664_s3 = inlined_call_operand.vmem [shape: f32[32,32], index: 3, kind: input, shape index: {}]   ;;  %s665_s5 = inlined_call_operand.vmem [shape: f32[16,32], index: 5, kind: input, shape index: {}]   ;;  %s666_s9 = inlined_call_operand.vmem [shape: f32[16,8], index: 9, kind: output, shape index: {}]  }
   0x1   :  { %v32_v0 = vld [vmem:[%s657_s0] sm:$0xff]  ;;  %v33_v1 = vld [vmem:[%s657_s0 + $0x8] sm:$0xff]  ;;  %510 = vset.pattern.permute.xlu0 %v512_v3  ;;  %511 = vset.pattern.permute.xlu1 %v512_v3  ;;  %v40_v6 = vld [vmem:[%s659_s2 + $0x10] sm:$0xff] }
   0x2   :  { %v34_v2 = vld [vmem:[%s658_s1] sm:$0xff]  ;;  %v489_v4 = vpack.c.bf16 %v33_v1, %v32_v0  ;;  %v35_v7 = vld [vmem:[%s658_s1 + $0x8] sm:$0xff]  ;;  %54 = vperm.xlu1 %511, %v40_v6   ;;  %v36_v9 = vld [vmem:[%s658_s1 + $0x10] sm:$0xff] }
   0x3   :  { %458 = vmatprep.mubr.msk.f32.mxu0 %vm62_vm0, %v34_v2  ;;  %v38_v5 = vld [vmem:[%s659_s2] sm:$0xff]  ;;  %v39_v8 = vld [vmem:[%s659_s2 + $0x8] sm:$0xff]  ;;  %v41_v10 = vld [vmem:[%s659_s2 + $0x18] sm:$0xff] }
   0x4   :  { %490 = vmatprep.subr.bf16.mxu0 %v489_v4  ;;  %44 = vperm.xlu0 %510, %v38_v5   ;;  %v37_v11 = vld [vmem:[%s658_s1 + $0x18] sm:$0xff]  ;;  %v168_v12 = vld [vmem:[%s660_s4] sm:$0xff]  ;;  %v169_v13 = vld [vmem:[%s660_s4 + $0x8] sm:$0xff] }
   0x5   :  { %492 = vmatpush3.bf16.msra.mxu0 %v489_v4  ;;  %v170_v14 = vld [vmem:[%s660_s4 + $0x10] sm:$0xff]  ;;  %v171_v15 = vld [vmem:[%s660_s4 + $0x18] sm:$0xff]  ;;  %v296_v16 = vld [vmem:[%s661_s6] sm:$0xff] }
   0x6   :  { %59 = vperm.xlu1 %511, %v41_v10   ;;  %v297_v17 = vld [vmem:[%s661_s6 + $0x8] sm:$0xff]  ;;  %v389_v18 = vld [vmem:[%s662_s7] sm:$0xff]  ;;  %v166_v42 = vld [vmem:[%s664_s3 + $0x10] sm:$0xff] }
   0x7   :  { %v390_v19 = vld [vmem:[%s662_s7 + $0x8] sm:$0xff]  ;;  %v391_v20 = vld [vmem:[%s663_s8] sm:$0xff]  ;;  %v167_v43 = vld [vmem:[%s664_s3 + $0x18] sm:$0xff] }
   0x8   :  { %459 = vmatmul.mubr.msk.f32.vlgmr.msra.gmra.mrb[0].mxu0 %vm62_vm0, %v35_v7  ;;  %49 = vperm.xlu0 %510, %v39_v8   ;;  %v392_v21 = vld [vmem:[%s663_s8 + $0x8] sm:$0xff]  ;;  %v164_v22 = vld [vmem:[%s664_s3] sm:$0xff] }
   0x9   :  { %461 = vmatprep.mubr.msk.f32.mxu0 %vm62_vm0, %v36_v9  ;;  %472 = vmatprep.mubr.msk.f32.mxu1 %vm192_vm1, %v164_v22  ;;  %v165_v41 = vld [vmem:[%s664_s3 + $0x8] sm:$0xff]  ;;  %v294_v44 = vld [vmem:[%s665_s5] sm:$0xff] }
   0xa   :  { %179 = vperm.xlu1 %511, %v169_v13   ;;  %v295_v63 = vld [vmem:[%s665_s5 + $0x8] sm:$0xff] }
   0xc   :  { %462 = vmatmul.mubr.msk.f32.gmra.mrb[2].mxu0 %vm62_vm0, %v37_v11  ;;  %174 = vperm.xlu0 %510, %v168_v12  }
   0xd   :  { %486 = vmatprep.mubr.msk.f32.mxu0 %vm192_vm1, %v294_v44 }
   0xe   :  { %189 = vperm.xlu1 %511, %v171_v15  }
  0x10   :  { %184 = vperm.xlu0 %510, %v170_v14  }
  0x12   :  { %305 = vperm.xlu1 %511, %v297_v17  }
  0x14   :  { %300 = vperm.xlu0 %510, %v296_v16  }
  0x16   :  { %400 = vperm.xlu1 %511, %v390_v19  }
  0x18   :  { %395 = vperm.xlu0 %510, %v389_v18  }
  0x1a   :  { %412 = vperm.xlu1 %511, %v392_v21  }
  0x1c   :  { %407 = vperm.xlu0 %510, %v391_v20  }
  0x81   :  { %v55_v24 = vpop.permute.xlu1 %54 }
  0x83   :  { %v45_v23 = vpop.permute.xlu0 %44 }
  0x85   :  { %v60_v31 = vpop.permute.xlu1 %59 }
  0x87   :  { %v50_v25 = vpop.permute.xlu0 %49 }
  0x89   :  { %v180_v45 = vpop.permute.xlu1 %179 }
  0x8b   :  { %v175_v46 = vpop.permute.xlu0 %174 }
  0x8d   :  { %v190_v52 = vpop.permute.xlu1 %189 }
  0x8f   :  { %v185_v55 = vpop.permute.xlu0 %184 }
  0x91   :  { %v306_v0 = vpop.permute.xlu1 %305 }
  0x93   :  { %v301_v1 = vpop.permute.xlu0 %300 }
  0x95   :  { %v401_v2 = vpop.permute.xlu1 %400 }
  0x97   :  { %v396_v3 = vpop.permute.xlu0 %395 }
  0x99   :  { %v413_v9 = vpop.permute.xlu1 %412 }
  0x9b   :  { %v408_v11 = vpop.permute.xlu0 %407 }
  0xdb   :  { %v460_v26 = vpop.f32.mrb[0].mxu0 }
  0xdc   :  { %v147_v27 = vadd.f32 %v460_v26, %v50_v25  ;;  %v141_v28 = vpop.f32.mrb[1].mxu0 }
  0xdd   :  { %v142_v29 = vadd.f32 %v141_v28, %v45_v23 }
  0xde   :  { %v161_v30 = vmax.f32 %v147_v27, 0.0 }
  0xdf   :  { %v160_v32 = vmax.f32 %v142_v29, 0.0  ;;  %v463_v33 = vpop.f32.mrb[2].mxu0 }
  0xe0   :  { %v157_v34 = vadd.f32 %v463_v33, %v60_v31  ;;  %v151_v35 = vpop.f32.mrb[3].mxu0 }
  0xe1   :  { %v152_v36 = vadd.f32 %v151_v35, %v55_v24  ;;  %v493_v37 = vpack.c.bf16 %v161_v30, %v160_v32 }
  0xe2   :  { %v163_v38 = vmax.f32 %v157_v34, 0.0 }
  0xe3   :  { %v162_v39 = vmax.f32 %v152_v36, 0.0  ;;  %494 = vmatprep.subr.bf16.mxu1 %v493_v37 }
  0xe4   :  { %496 = vmatpush3.bf16.msra.mxu1 %v493_v37 }
  0xe5   :  { %v497_v40 = vpack.c.bf16 %v163_v38, %v162_v39 }
  0xe7   :  { %498 = vmatprep.subr.bf16.mxu1 %v497_v40 }
  0xe8   :  { %500 = vmatpush3.bf16.msra.mxu1 %v497_v40 }
  0xeb   :  { %473 = vmatmul.mubr.msk.f32.vlgmr.msra.gmra.mrb[0].mxu1 %vm192_vm1, %v165_v41 }
  0xec   :  { %475 = vmatprep.mubr.msk.f32.mxu1 %vm192_vm1, %v166_v42 }
  0xef   :  { %476 = vmatmul.mubr.msk.f32.gmra.mrb[2].mxu1 %vm192_vm1, %v167_v43 }
 0x1be   :  { %v474_v47 = vpop.f32.mrb[0].mxu1 }
 0x1bf   :  { %v277_v48 = vadd.f32 %v474_v47, %v180_v45  ;;  %v271_v49 = vpop.f32.mrb[1].mxu1 }
 0x1c0   :  { %v272_v50 = vadd.f32 %v271_v49, %v175_v46 }
 0x1c1   :  { %v291_v51 = vmax.f32 %v277_v48, 0.0 }
 0x1c2   :  { %v290_v53 = vmax.f32 %v272_v50, 0.0  ;;  %v477_v54 = vpop.f32.mrb[2].mxu1 }
 0x1c3   :  { %v287_v56 = vadd.f32 %v477_v54, %v190_v52  ;;  %v281_v57 = vpop.f32.mrb[3].mxu1 }
 0x1c4   :  { %v501_v58 = vpack.c.bf16 %v291_v51, %v290_v53  ;;  %v282_v59 = vadd.f32 %v281_v57, %v185_v55 }
 0x1c5   :  { %v293_v60 = vmax.f32 %v287_v56, 0.0 }
 0x1c6   :  { %v292_v61 = vmax.f32 %v282_v59, 0.0  ;;  %502 = vmatprep.subr.bf16.mxu0 %v501_v58 }
 0x1c7   :  { %504 = vmatpush3.bf16.msra.mxu0 %v501_v58 }
 0x1c8   :  { %v505_v62 = vpack.c.bf16 %v293_v60, %v292_v61 }
 0x1ca   :  { %506 = vmatprep.subr.bf16.mxu0 %v505_v62 }
 0x1cb   :  { %508 = vmatpush3.bf16.msra.mxu0 %v505_v62 }
 0x1ce   :  { %487 = vmatmul.mubr.msk.f32.vlgmr.msra.gmra.mrb[4].mxu0 %vm192_vm1, %v295_v63 }
 0x2a1   :  { %v488_v4 = vpop.f32.mrb[4].mxu0 }
 0x2a2   :  { %v386_v5 = vadd.f32 %v488_v4, %v306_v0  ;;  %v380_v6 = vpop.f32.mrb[5].mxu0 }
 0x2a3   :  { %v381_v7 = vadd.f32 %v380_v6, %v301_v1 }
 0x2a4   :  { %v404_v8 = vmax.f32 %v401_v2, %v386_v5 }
 0x2a5   :  { %v403_v10 = vmax.f32 %v396_v3, %v381_v7 }
 0x2a6   :  { %v416_v12 = vmin.f32 %v413_v9, %v404_v8 }
 0x2a7   :  { %v415_v13 = vmin.f32 %v408_v11, %v403_v10 }
 0x2a8   :  { %419 = vst.msk [vmem:[%s666_s9 + $0x8] sm:$0xff] %vm417_vm2, %v416_v12 }
 0x2a9   :  { %418 = vst.msk [vmem:[%s666_s9] sm:$0xff] %vm417_vm2, %v415_v13 }

</bundles_post_ra>
